<compile_context>
chip_gen: v7x
topology: tpu7x:2x2x1
jax: 0.10.0
libtpu: 0.0.40
codegen_flags: <defaults>
</compile_context>

<pallas_src>
import math
import functools

import jax
import jax.numpy as jnp
from jax.experimental import pallas as pl
from jax.experimental.pallas import tpu as pltpu


def make_positional_encoding_table(max_len: int, d_model: int, dtype=jnp.float32):
    """Deterministic 'buffer' construction, identical to the torch __init__."""
    position = jnp.arange(max_len, dtype=jnp.float32)[:, None]                   # (max_len, 1)
    div_term = jnp.exp(
        jnp.arange(0, d_model, 2, dtype=jnp.float32) * (-math.log(10000.0) / d_model)
    )                                                                            # (d_model//2,)
    pe = jnp.zeros((max_len, d_model), dtype=jnp.float32)
    pe = pe.at[:, 0::2].set(jnp.sin(position * div_term))
    pe = pe.at[:, 1::2].set(jnp.cos(position * div_term))
    return pe.astype(dtype)


# ---------------------------------------------------------------------------
# Kernels (all operate on (B, TN) x/out tiles and a (1, TN) pe tile).
# ---------------------------------------------------------------------------
def _pe_add_kernel(x_ref, pe_ref, o_ref):
    # Eval mode: dropout is the identity.
    o_ref[...] = (x_ref[...] + pe_ref[...]).astype(o_ref.dtype)


def _pe_add_dropout_prng_kernel(seed_ref, x_ref, pe_ref, o_ref, *, keep_threshold, scale):
    # Inverted dropout with the on-chip PRNG: keep iff uniform u32 >= p * 2^32.
    pltpu.prng_seed(seed_ref[0] + pl.program_id(0))          # decorrelate per tile
    y = x_ref[...] + pe_ref[...]
    bits = pltpu.bitcast(pltpu.prng_random_bits(y.shape), jnp.uint32)
    keep = bits >= jnp.uint32(keep_threshold)
    o_ref[...] = jnp.where(keep, y * scale, jnp.zeros_like(y)).astype(o_ref.dtype)


def _pe_add_dropout_streamed_kernel(x_ref, pe_ref, u_ref, o_ref, *, p, scale):
    # Fallback: uniforms generated in the wrapper and streamed in like x.
    y = x_ref[...] + pe_ref[...]
    keep = u_ref[...] >= jnp.float32(p)
    o_ref[...] = jnp.where(keep, y * scale, jnp.zeros_like(y)).astype(o_ref.dtype)


# ---------------------------------------------------------------------------
# Wrapper
# ---------------------------------------------------------------------------
def _pick_lane_tile(N, B, itemsize, cap_bytes=4 * 1024 * 1024):
    """Largest lane tile (multiple of 128) whose x tile fits in cap_bytes, else full N."""
    if N * B * itemsize <= cap_bytes:
        return N                                             # full extent: always legal
    tn = max(128, (cap_bytes // (B * itemsize)) // 128 * 128)
    return min(tn, N)


def positional_encoding(x, pe_table, *, p: float = 0.1, training: bool = False,
                        seed: int = 0, lane_tile=None):
    """x: (B, S, D); pe_table: (max_len, D). Returns dropout(x + pe[:S])."""
    B, S, D = x.shape
    N = S * D

    # Glue in JAX: slice pe[:x.size(1)], cast once to x.dtype, flatten (free reshapes).
    pe_s = pe_table[:S].astype(x.dtype).reshape(1, N)
    x2 = x.reshape(B, N)

    if lane_tile is None:
        TN = _pick_lane_tile(N, B, x.dtype.itemsize)
    else:
        TN = min(int(lane_tile), N)
    if TN < N:
        TN = max(128, (TN // 128) * 128)                     # lane dim: multiple of 128 or full N
    n_chunks = pl.cdiv(N, TN)

    x_spec = pl.BlockSpec((B, TN), lambda i, *_: (0, i))     # full batch on sublanes
    pe_spec = pl.BlockSpec((1, TN), lambda i, *_: (0, i))    # read once, broadcast over B
    out_spec = pl.BlockSpec((B, TN), lambda i, *_: (0, i))
    out_shape = jax.ShapeDtypeStruct((B, N), x.dtype)
    cparams = pltpu.CompilerParams(dimension_semantics=("parallel",))

    use_dropout = training and p > 0.0
    if not use_dropout:
        out2 = pl.pallas_call(
            _pe_add_kernel,
            out_shape=out_shape,
            grid=(n_chunks,),
            in_specs=[x_spec, pe_spec],
            out_specs=out_spec,
            compiler_params=cparams,
        )(x2, pe_s)
        return out2.reshape(B, S, D)

    if p >= 1.0:
        # Everything dropped; avoid 1/(1-p) = inf inside the kernel.
        return jnp.zeros_like(x)

    scale = 1.0 / (1.0 - p)
    keep_threshold = min(int(round(p * 2.0 ** 32)), 2 ** 32 - 1)
    seed_arr = jnp.asarray([seed], dtype=jnp.int32)

    try:
        kernel = functools.partial(_pe_add_dropout_prng_kernel,
                                   keep_threshold=keep_threshold, scale=scale)
        out2 = pl.pallas_call(
            kernel,
            out_shape=out_shape,
            grid_spec=pltpu.PrefetchScalarGridSpec(
                num_scalar_prefetch=1,                       # seed lands in SMEM
                grid=(n_chunks,),
                in_specs=[x_spec, pe_spec],
                out_specs=out_spec,
            ),
            compiler_params=cparams,
        )(seed_arr, x2, pe_s)
        return out2.reshape(B, S, D)
    except Exception:
        # TODO(synk): fallback for environments where the stateful TPU PRNG is
        # unavailable (e.g. interpret mode); costs an extra B*S*D*4 bytes of HBM read.
        u = jax.random.uniform(jax.random.PRNGKey(seed), (B, N), dtype=jnp.float32)
        u_spec = pl.BlockSpec((B, TN), lambda i, *_: (0, i))
        kernel = functools.partial(_pe_add_dropout_streamed_kernel, p=float(p), scale=scale)
        out2 = pl.pallas_call(
            kernel,
            out_shape=out_shape,
            grid=(n_chunks,),
            in_specs=[x_spec, pe_spec, u_spec],
            out_specs=out_spec,
            compiler_params=cparams,
        )(x2, pe_s, u)
        return out2.reshape(B, S, D)


if __name__ == "__main__":
    B, S, D = 2, 8, 32
    MAX_LEN = 64          # small stand-in for max_len=5000 (only pe[:S] is ever used)
    P_DROP = 0.1

    key = jax.random.PRNGKey(0)
    x = jax.random.normal(key, (B, S, D), dtype=jnp.float32)
    pe = make_positional_encoding_table(MAX_LEN, D, dtype=jnp.float32)
    ref = x + pe[:S][None]

    # Eval-mode forward (dropout = identity): exact check against pure-JAX reference.
    out_eval = jax.block_until_ready(positional_encoding(x, pe, p=P_DROP, training=False))
    assert out_eval.shape == (B, S, D)
    assert jnp.allclose(out_eval, ref, atol=1e-6), "eval-mode mismatch"

    # Same, but force multi-chunk tiling of the flattened axis (exercises the grid).
    out_tiled = jax.block_until_ready(
        positional_encoding(x, pe, p=P_DROP, training=False, lane_tile=128))
    assert jnp.allclose(out_tiled, ref, atol=1e-6), "tiled eval-mode mismatch"

    # Train-mode forward: every element must be either 0 (dropped) or ref/(1-p) (kept),
    # and the keep rate must be sane for p=0.1.
    out_train = jax.block_until_ready(
        positional_encoding(x, pe, p=P_DROP, training=True, seed=123))
    scaled = ref / (1.0 - P_DROP)
    is_zero = jnp.abs(out_train) <= 1e-6
    is_kept = jnp.abs(out_train - scaled) <= 1e-5 * (1.0 + jnp.abs(scaled))
    assert bool(jnp.all(is_zero | is_kept)), "train-mode values are not {0, (x+pe)/(1-p)}"
    keep_frac = float(jnp.mean(is_kept.astype(jnp.float32)))
    assert 0.5 <= keep_frac <= 1.0, f"implausible keep fraction {keep_frac}"

    print("KERNEL_OK")
</pallas_src>

<mosaic_0001>
module attributes {stable_mosaic.version = 11 : i64} {
  func.func @_pe_add_kernel(%arg0: i32, %arg1: memref<2x256xf32, #tpu.memory_space<vmem>>, %arg2: memref<1x256xf32, #tpu.memory_space<vmem>>, %arg3: memref<2x256xf32, #tpu.memory_space<vmem>>) attributes {dimension_semantics = [#tpu.dimension_semantics<parallel>], iteration_bounds = array<i64: 1>, scalar_prefetch = 0 : i64, scratch_operands = 0 : i64, tpu.core_type = #tpu.core_type<tc>, window_params = [{transform_indices = @transform_0, window_bounds = array<i64: 2, 256>}, {transform_indices = @transform_1, window_bounds = array<i64: 1, 256>}, {transform_indices = @transform_2, window_bounds = array<i64: 2, 256>}]} {
    %c0 = arith.constant 0 : index
    %c0_0 = arith.constant 0 : index
    %0 = vector.load %arg1[%c0, %c0_0] : memref<2x256xf32, #tpu.memory_space<vmem>>, vector<2x256xf32>
    %c0_1 = arith.constant 0 : index
    %c0_2 = arith.constant 0 : index
    %1 = vector.load %arg2[%c0_1, %c0_2] : memref<1x256xf32, #tpu.memory_space<vmem>>, vector<1x256xf32>
    %2 = vector.broadcast %1 : vector<1x256xf32> to vector<2x256xf32>
    %3 = arith.addf %0, %2 : vector<2x256xf32>
    %c0_3 = arith.constant 0 : index
    %c0_4 = arith.constant 0 : index
    %4 = vector.load %arg3[%c0_3, %c0_4] : memref<2x256xf32, #tpu.memory_space<vmem>>, vector<2x256xf32>
    tpu.vector_store %arg3[%c0_3, %c0_4], %3 {strides = array<i32>} : memref<2x256xf32, #tpu.memory_space<vmem>>, vector<2x256xf32>,
    return
  }
  func.func @transform_0(%arg0: i32) -> (i32, i32) {
    %c0_i32 = arith.constant 0 : i32
    %c0_i32_0 = arith.constant 0 : i32
    return %c0_i32, %arg0 : i32, i32
  }
  func.func @transform_1(%arg0: i32) -> (i32, i32) {
    %c0_i32 = arith.constant 0 : i32
    %c0_i32_0 = arith.constant 0 : i32
    return %c0_i32, %arg0 : i32, i32
  }
  func.func @transform_2(%arg0: i32) -> (i32, i32) {
    %c0_i32 = arith.constant 0 : i32
    %c0_i32_0 = arith.constant 0 : i32
    return %c0_i32, %arg0 : i32, i32
  }
}

</mosaic_0001>

<bundles_post_ra>
// kernel: tpu_custom_call.1
= control target key start
LH: loop header
LB: loop body
LE: loop exit
PB: predicated region body
PF: predicated region fallthrough
CT: control target
= control target key end

     0   :  { %7 = vsyncpa [#allocation3], 0  ;;  %s157_s0 = inlined_call_operand.hbm [shape: f32[2,256], index: 0, kind: input, shape index: {}]   ;;  %s158_s1 = inlined_call_operand.vmem [shape: f32[1,256], index: 1, kind: input, shape index: {}]   ;;  %s159_s2 = inlined_call_operand.hbm [shape: f32[2,256], index: 2, kind: output, shape index: {}]  }
   0x1   :  { %8 = vsyncpa [#allocation4], 0  ;;  %s112_s9 = smov [#allocation2]   ;;  %s64_s13 = scalar_lea.hbm %s157_s0, 64 }
   0x2   :  { %s15_s10 = sshll.u32 %s112_s9, 4  ;;  %p65_p0 = scmp.ne.s32.totalorder %s157_s0, %s64_s13  ;;  %s16_s10 = int_to_ptr.vmem [resolvable:$true] %s15_s10 }
   0x3   :  { %p68_p1 = scmp.lt.u32.totalorder %s64_s13, %s157_s0 }
   0x5   :  { %p70_p2 = pnand %p68_p1, %p65_p0 }
   0x7   :  { %73 = shalt.err (!%p70_p2)
}
   0x8   :  { %s74_s18 = scalar_lea.vmem %s16_s10, 64  ;;  %p79_p4 = scmp.lt.s32.totalorder %s16_s10, %s16_s10 }
   0x9   :  { %p75_p3 = scmp.ne.s32.totalorder %s16_s10, %s74_s18  ;;  %p80_p5 = scmp.lt.s32.totalorder %s74_s18, %s74_s18 }
   0xb   :  { %p81_p6 = por %p80_p5, %p79_p4 }
   0xd   :  { %p82_p7 = pnand %p81_p6, %p75_p3 }
   0xf   :  { %85 = shalt.err (!%p82_p7)
}
  0x10   :  { %18 = dma.hbm_to_vmem [thread:$0]  %s157_s0, 64, %s16_s10, [#allocation3]  }
  0x11   :  { %108 = dma.done.wait [#allocation3], 64  }
  0x12   :  { %109 = vsyncadd [#allocation3], 4294967232  ;;  %v27_v0 = vlaneseq  ;;  %v113_v1 = vmov 1983009808   ;;  %v25_v7 = vld [vmem:[%s158_s1] sm:$0x3] }
  0x13   :  { %v37_v2 = vunpack.c.l.s4 %v113_v1  ;;  %v24_v12 = vld [vmem:[#allocation2] sm:$0xf]  ;;  %s114_s23 = smov [#allocation5]  }
  0x14   :  { %v28_v3 = vshrl.u32 %v27_v0, 7  ;;  %s52_s0 = sshll.u32 %s114_s23, 4  ;;  %s53_s0 = int_to_ptr.vmem [resolvable:$true] %s52_s0 }
  0x15   :  { %v38_v6 = vunpack.c.0.s8 %v37_v2  ;;  %s86_s24 = scalar_lea.vmem %s53_s0, 64  ;;  %p91_p9 = scmp.lt.s32.totalorder %s53_s0, %s53_s0 }
  0x16   :  { %v29_v4 = vsub.s32 0, %v28_v3  ;;  %v33_v5 = vsub.s32 1, %v28_v3  ;;  %p87_p8 = scmp.ne.s32.totalorder %s53_s0, %s86_s24  ;;  %p92_p10 = scmp.lt.s32.totalorder %s86_s24, %s86_s24 }
  0x17   :  { %v41_v10 = vsub.s32 %v38_v6, %v28_v3 }
  0x18   :  { %v30_v8 = vrot.slane %v25_v7, %v29_v4  ;;  %v34_v9 = vrot.slane %v25_v7, %v33_v5  ;;  %p93_p11 = por %p92_p10, %p91_p9 }
  0x1a   :  { %v35_v11 = vcombine.low %v30_v8, %v34_v9  ;;  %p94_p12 = pnand %p93_p11, %p87_p8 }
  0x1c   :  { %v42_v13 = vrot.slane %v35_v11, %v41_v10 }
  0x1e   :  { %v44_v14 = vadd.f32 %v42_v13, %v24_v12 }
  0x20   :  { %45 = vst [vmem:[#allocation5] sm:$0xf] %v44_v14 }
  0x21   :  { %97 = shalt.err (!%p94_p12)
}
  0x22   :  { %s98_s26 = scalar_lea.hbm %s159_s2, 64 }
  0x23   :  { %p99_p13 = scmp.ne.s32.totalorder %s159_s2, %s98_s26  ;;  %p102_p0 = scmp.lt.u32.totalorder %s98_s26, %s159_s2 }
  0x25   :  { %p104_p1 = pnand %p102_p0, %p99_p13 }
  0x27   :  { %107 = shalt.err (!%p104_p1)
}
  0x28   :  { %55 = dma.vmem_to_hbm [thread:$0]  %s53_s0, 64, %s159_s2, [#allocation4]  }
  0x29   :  { %110 = dma.done.wait [#allocation4], 64  }
  0x2a   :  { %111 = vsyncadd [#allocation4], 4294967232 }
  0x2b   :  { %59 = vsyncpa [#allocation3], 1 }
  0x2c   :  { %60 = vsyncpa [#allocation4], 1 }

</bundles_post_ra>
